<compile_context>
chip_gen: v6e
topology: v6e:2x2x1
jax: 0.10.0
libtpu: 0.0.40
codegen_flags: <defaults>
</compile_context>

<pallas_src>
import functools

import jax
import jax.numpy as jnp
from jax.experimental import pallas as pl
from jax.experimental.pallas import tpu as pltpu

LANE = 128


def _round_up(n, m):
    return ((n + m - 1) // m) * m


def ffn_kernel(x_ref, w1_ref, b1_ref, w2_ref, b2_ref, o_ref):
    # x_ref : (TB, F) f32      w1_ref: (F, Hp) bf16    b1_ref: (1, Hp) f32
    # w2_ref: (Hp, Lp) bf16    b2_ref: (1, L)  f32     o_ref : (TB, L) f32
    L = o_ref.shape[-1]

    # Cast in-kernel (no separate XLA pad/cast pass over x).
    x = x_ref[...].astype(w1_ref.dtype)                          # (TB, F) bf16

    h = jnp.dot(x, w1_ref[...],
                preferred_element_type=jnp.float32)              # (TB, Hp) MXU, f32 acc
    h = jnp.maximum(h + b1_ref[...], 0.0)                        # bias + ReLU in f32 (VPU)

    o = jnp.dot(h.astype(w2_ref.dtype), w2_ref[...],
                preferred_element_type=jnp.float32)              # (TB, Lp) MXU, f32 acc

    # Drop the lane padding *before* the store: only (TB, L) bytes hit VMEM/HBM.
    o_ref[...] = (o[:, :L] + b2_ref[...]).astype(o_ref.dtype)


@functools.partial(jax.jit, static_argnames=("block_batch", "compute_dtype"))
def ffn_forward(x, w1, b1, w2, b2, *, block_batch=1024, compute_dtype=jnp.bfloat16):
    """Fused FFN forward: relu(x @ w1 + b1) @ w2 + b2.

    x: (B, F) f32, w1: (F, H), b1: (H,), w2: (H, L), b2: (L,)  ->  (B, L) f32
    """
    B, F = x.shape
    H = w1.shape[1]
    L = w2.shape[1]

    Hp = _round_up(H, LANE)                        # lane-dense hidden dim (compute only)
    Lp = _round_up(L, LANE)                        # lane-dense label dim (compute only)
    TB = max(8, _round_up(min(block_batch, B), 8))  # batch tile (multiple of 8 sublanes)
    Bp = _round_up(B, TB)
    grid = Bp // TB

    # One-time zero padding of the tiny, VMEM-resident weights.  Padded hidden
    # units have zero w1 cols / zero b1 / zero w2 rows -> contribute exactly 0
    # through the ReLU; padded label columns never leave registers.
    w1p = jnp.zeros((F, Hp), compute_dtype).at[:, :H].set(w1.astype(compute_dtype))
    b1p = jnp.zeros((1, Hp), jnp.float32).at[:, :H].set(b1.reshape(1, H))
    w2p = jnp.zeros((Hp, Lp), compute_dtype).at[:H, :L].set(w2.astype(compute_dtype))
    b2r = b2.reshape(1, L).astype(jnp.float32)

    # x goes in untouched (f32); only pad batch rows when B isn't a tile multiple.
    xin = x if Bp == B else jnp.pad(x, ((0, Bp - B), (0, 0)))

    flops = 2 * Bp * F * Hp + 2 * Bp * Hp * Lp
    bytes_accessed = (Bp * F * 4 + F * Hp * 2 + Hp * 4 + Hp * Lp * 2 + L * 4
                      + Bp * L * 4)

    out = pl.pallas_call(
        ffn_kernel,
        out_shape=jax.ShapeDtypeStruct((Bp, L), jnp.float32),
        grid_spec=pltpu.PrefetchScalarGridSpec(
            num_scalar_prefetch=0,
            grid=(grid,),
            in_specs=[
                pl.BlockSpec((TB, F), lambda i: (i, 0)),    # x: streams per batch tile
                pl.BlockSpec((F, Hp), lambda i: (0, 0)),    # w1: VMEM resident
                pl.BlockSpec((1, Hp), lambda i: (0, 0)),    # b1: VMEM resident
                pl.BlockSpec((Hp, Lp), lambda i: (0, 0)),   # w2: VMEM resident
                pl.BlockSpec((1, L), lambda i: (0, 0)),     # b2: VMEM resident
            ],
            out_specs=pl.BlockSpec((TB, L), lambda i: (i, 0)),  # exact-L store
        ),
        compiler_params=pltpu.CompilerParams(
            dimension_semantics=("parallel",),              # megacore-shardable batch axis
        ),
        cost_estimate=pl.CostEstimate(
            flops=flops, transcendentals=0, bytes_accessed=bytes_accessed),
    )(xin, w1p, b1p, w2p, b2r)

    return out if Bp == B else out[:B]


def ffn_reference(x, w1, b1, w2, b2, compute_dtype=jnp.float32):
    """Pure-JAX reference mirroring the kernel's cast points."""
    h = jnp.dot(x.astype(compute_dtype), w1.astype(compute_dtype),
                preferred_element_type=jnp.float32) + b1.reshape(1, -1)
    h = jnp.maximum(h, 0.0)
    o = jnp.dot(h.astype(compute_dtype), w2.astype(compute_dtype),
                preferred_element_type=jnp.float32) + b2.reshape(1, -1)
    return o


def init_params(key, no_features, no_hidden, no_labels):
    """Matches torch.nn.Linear default init: U(-1/sqrt(fan_in), +1/sqrt(fan_in))."""
    k1, k2, k3, k4 = jax.random.split(key, 4)
    bound1 = 1.0 / jnp.sqrt(no_features)
    bound2 = 1.0 / jnp.sqrt(no_hidden)
    # Stored as (in, out) so the kernel computes x @ w (== x @ W.T in torch terms).
    w1 = jax.random.uniform(k1, (no_features, no_hidden), jnp.float32, -bound1, bound1)
    b1 = jax.random.uniform(k2, (no_hidden,), jnp.float32, -bound1, bound1)
    w2 = jax.random.uniform(k3, (no_hidden, no_labels), jnp.float32, -bound2, bound2)
    b2 = jax.random.uniform(k4, (no_labels,), jnp.float32, -bound2, bound2)
    return w1, b1, w2, b2


if __name__ == "__main__":
    no_features = 8
    no_hidden = 32
    no_labels = 1
    batch = 512            # 4 grid steps of 128 -> both v7x TensorCores busy + pipelined

    key = jax.random.PRNGKey(0)
    kx, kp = jax.random.split(key)

    x = jax.random.normal(kx, (batch, no_features), jnp.float32)
    w1, b1, w2, b2 = init_params(kp, no_features, no_hidden, no_labels)

    out = ffn_forward(x, w1, b1, w2, b2, block_batch=128, compute_dtype=jnp.bfloat16)
    jax.block_until_ready(out)
    assert out.shape == (batch, no_labels)

    # Tight check against a reference with the same bf16-input / f32-accumulate math.
    ref_bf16 = ffn_reference(x, w1, b1, w2, b2, compute_dtype=jnp.bfloat16)
    assert jnp.allclose(out, ref_bf16, atol=1e-4, rtol=1e-4), "mismatch vs bf16 reference"

    # Loose check against the exact fp32 module semantics (bf16 MXU inputs).
    ref_f32 = ffn_reference(x, w1, b1, w2, b2, compute_dtype=jnp.float32)
    assert jnp.allclose(out, ref_f32, atol=5e-2, rtol=5e-2), "mismatch vs fp32 reference"

    print("KERNEL_OK")
</pallas_src>

<mosaic_0001>
module attributes {stable_mosaic.version = 11 : i64} {
  func.func @ffn_kernel(%arg0: i32, %arg1: memref<128x8xf32, #tpu.memory_space<vmem>>, %arg2: memref<8x128xbf16, #tpu.memory_space<vmem>>, %arg3: memref<1x128xf32, #tpu.memory_space<vmem>>, %arg4: memref<128x128xbf16, #tpu.memory_space<vmem>>, %arg5: memref<1x1xf32, #tpu.memory_space<vmem>>, %arg6: memref<128x1xf32, #tpu.memory_space<vmem>>) attributes {dimension_semantics = [#tpu.dimension_semantics<parallel>], iteration_bounds = array<i64: 4>, scalar_prefetch = 0 : i64, scratch_operands = 0 : i64, tpu.core_type = #tpu.core_type<tc>, window_params = [{transform_indices = @transform_0, window_bounds = array<i64: 128, 8>}, {pipeline_mode = #tpu.pipeline_mode<synchronous>, transform_indices = @transform_1, window_bounds = array<i64: 8, 128>}, {pipeline_mode = #tpu.pipeline_mode<synchronous>, transform_indices = @transform_2, window_bounds = array<i64: 1, 128>}, {pipeline_mode = #tpu.pipeline_mode<synchronous>, transform_indices = @transform_3, window_bounds = array<i64: 128, 128>}, {pipeline_mode = #tpu.pipeline_mode<synchronous>, transform_indices = @transform_4, window_bounds = array<i64: 1, 1>}, {transform_indices = @transform_5, window_bounds = array<i64: 128, 1>}]} {
    %c0 = arith.constant 0 : index
    %c0_0 = arith.constant 0 : index
    %0 = vector.load %arg1[%c0, %c0_0] : memref<128x8xf32, #tpu.memory_space<vmem>>, vector<128x8xf32>
    %1 = arith.truncf %0 : vector<128x8xf32> to vector<128x8xbf16>
    %c0_1 = arith.constant 0 : index
    %c0_2 = arith.constant 0 : index
    %2 = vector.load %arg2[%c0_1, %c0_2] : memref<8x128xbf16, #tpu.memory_space<vmem>>, vector<8x128xbf16>
    %cst = arith.constant dense<0.000000e+00> : vector<128x128xf32>
    %3 = tpu.matmul %1, %2, %cst {dimension_numbers = #tpu.dot_dimension_numbers<[1], [0], [0], [1], [0, 0, 1, 1], [], []>} : vector<128x8xbf16>, vector<8x128xbf16>, vector<128x128xf32> -> vector<128x128xf32>
    %c0_3 = arith.constant 0 : index
    %c0_4 = arith.constant 0 : index
    %4 = vector.load %arg3[%c0_3, %c0_4] : memref<1x128xf32, #tpu.memory_space<vmem>>, vector<1x128xf32>
    %5 = vector.broadcast %4 : vector<1x128xf32> to vector<128x128xf32>
    %6 = arith.addf %3, %5 : vector<128x128xf32>
    %cst_5 = arith.constant 0.000000e+00 : f32
    %7 = vector.broadcast %cst_5 : f32 to vector<128x128xf32>
    %8 = arith.maximumf %6, %7 : vector<128x128xf32>
    %9 = arith.truncf %8 : vector<128x128xf32> to vector<128x128xbf16>
    %c0_6 = arith.constant 0 : index
    %c0_7 = arith.constant 0 : index
    %10 = vector.load %arg4[%c0_6, %c0_7] : memref<128x128xbf16, #tpu.memory_space<vmem>>, vector<128x128xbf16>
    %cst_8 = arith.constant dense<0.000000e+00> : vector<128x128xf32>
    %11 = tpu.matmul %9, %10, %cst_8 {dimension_numbers = #tpu.dot_dimension_numbers<[1], [0], [0], [1], [0, 0, 1, 1], [], []>} : vector<128x128xbf16>, vector<128x128xbf16>, vector<128x128xf32> -> vector<128x128xf32>
    %12 = vector.extract_strided_slice %11 {offsets = [0, 0], sizes = [128, 1], strides = [1, 1]} : vector<128x128xf32> to vector<128x1xf32>
    %c0_9 = arith.constant 0 : index
    %c0_10 = arith.constant 0 : index
    %13 = vector.load %arg5[%c0_9, %c0_10] : memref<1x1xf32, #tpu.memory_space<vmem>>, vector<1x1xf32>
    %14 = vector.broadcast %13 : vector<1x1xf32> to vector<128x1xf32>
    %15 = arith.addf %12, %14 : vector<128x1xf32>
    %c0_11 = arith.constant 0 : index
    %c0_12 = arith.constant 0 : index
    %16 = vector.load %arg6[%c0_11, %c0_12] : memref<128x1xf32, #tpu.memory_space<vmem>>, vector<128x1xf32>
    tpu.vector_store %arg6[%c0_11, %c0_12], %15 {strides = array<i32>} : memref<128x1xf32, #tpu.memory_space<vmem>>, vector<128x1xf32>,
    return
  }
  func.func @transform_0(%arg0: i32) -> (i32, i32) {
    %c0_i32 = arith.constant 0 : i32
    %c0_i32_0 = arith.constant 0 : i32
    return %arg0, %c0_i32 : i32, i32
  }
  func.func @transform_1(%arg0: i32) -> (i32, i32) {
    %c0_i32 = arith.constant 0 : i32
    %c0_i32_0 = arith.constant 0 : i32
    %c0_i32_1 = arith.constant 0 : i32
    return %c0_i32, %c0_i32_0 : i32, i32
  }
  func.func @transform_2(%arg0: i32) -> (i32, i32) {
    %c0_i32 = arith.constant 0 : i32
    %c0_i32_0 = arith.constant 0 : i32
    %c0_i32_1 = arith.constant 0 : i32
    return %c0_i32, %c0_i32_0 : i32, i32
  }
  func.func @transform_3(%arg0: i32) -> (i32, i32) {
    %c0_i32 = arith.constant 0 : i32
    %c0_i32_0 = arith.constant 0 : i32
    %c0_i32_1 = arith.constant 0 : i32
    return %c0_i32, %c0_i32_0 : i32, i32
  }
  func.func @transform_4(%arg0: i32) -> (i32, i32) {
    %c0_i32 = arith.constant 0 : i32
    %c0_i32_0 = arith.constant 0 : i32
    %c0_i32_1 = arith.constant 0 : i32
    return %c0_i32, %c0_i32_0 : i32, i32
  }
  func.func @transform_5(%arg0: i32) -> (i32, i32) {
    %c0_i32 = arith.constant 0 : i32
    %c0_i32_0 = arith.constant 0 : i32
    return %arg0, %c0_i32 : i32, i32
  }
}

</mosaic_0001>

<bundles_post_ra>
// kernel: ffn_forward.1
= control target key start
LH: loop header
LB: loop body
LE: loop exit
PB: predicated region body
PF: predicated region fallthrough
CT: control target
= control target key end

     0   :  { %s848_s20 = smov 0   ;;  %s962_s0 = inlined_call_operand.vmem [shape: f32[512,8], index: 0, kind: input, shape index: {}]   ;;  %s963_s1 = inlined_call_operand.vmem [shape: bf16[8,128], index: 1, kind: input, shape index: {}]   ;;  %s964_s2 = inlined_call_operand.vmem [shape: f32[1,128], index: 2, kind: input, shape index: {}]   ;;  %s965_s3 = inlined_call_operand.vmem [shape: bf16[128,128], index: 3, kind: input, shape index: {}]   ;;  %s966_s4 = inlined_call_operand.<no memory space> [shape: f32[1,1], index: 4, kind: input, shape index: {}]   ;;  %s967_s5 = inlined_call_operand.vmem [shape: f32[512,1], index: 5, kind: output, shape index: {}]  }
   0x1   :  { %v10_v0 = vstv %s966_s4 }
   0x2   :  { %11 = vst [vmem:[#allocation2] sm:$0x1] %v10_v0 }
   0x3 LB: > { %s670_s21 = sadd.s32 4294967295, %s813_s20   ;;  %p674_p0 = scmp.ge.s32.totalorder %s813_s20, 1  ;;  %s813_s20 = sphi %s848_s20, %s17_s20  }
   0x4   : > { %p190_p1 = scmp.lt.s32.totalorder %s813_s20, 5 }
   0x6   : > { %p191_p2 = pnand %p674_p0, %p190_p1 }
   0x7   : > { %s675_s4 = sshll.u32 (!%p191_p2), %s670_s21, 4 }
   0x8   : > { %194 = sbr.rel (%p191_p2) target bundleno = 452 (0x1c4), region = 40  ;;  %p219_p3 = scmp.lt.s32.totalorder (!%p191_p2), %s675_s4, 63 }
   0xd   : > { %v255_v1 = vld [vmem:[%s963_s1] sm:$0xf]  ;;  %vm288_vm0 = vcmask 1043456   ;;  %v799_v2 = vld [vmem:[%s965_s3 + $0x38] sm:$0xff]   ;;  %v800_v4 = vld [vmem:[%s965_s3 + $0x30] sm:$0xff]   ;;  %s969_s4 = smov (!%p219_p3, %s675_s4), 63 }
   0xe   : > { %790 = vmatprep.subr.msk.bf16.mxu0 %vm288_vm0, %v255_v1  ;;  %v290_v3 = vsel %vm288_vm0, %v255_v1, 0  ;;  %774 = vmatprep.subr.bf16.mxu1 %v799_v2  ;;  %s676_s28 = sshll.u32 %s969_s4, 3  ;;  %v801_v5 = vld [vmem:[%s965_s3 + $0x28] sm:$0xff]   ;;  %vm263_vm1 = vcmask 64512   ;;  %v802_v16 = vld [vmem:[%s965_s3 + $0x20] sm:$0xff]   ;;  %v803_v20 = vld [vmem:[%s965_s3 + $0x18] sm:$0xff]  }
   0xf   : > { %725 = vmatpush3.bf16.msra.mxu0 %v290_v3  ;;  %782 = vmatpush3.bf16.msra.mxu1 %v799_v2  ;;  %s876_s8 = scalar_lea.vmem %s962_s0, %s676_s28  ;;  %v804_v32 = vld [vmem:[%s965_s3 + $0x10] sm:$0xff]   ;;  %v805_v33 = vld [vmem:[%s965_s3 + $0x8] sm:$0xff]   ;;  %v806_v34 = vld [vmem:[%s965_s3] sm:$0xff]   ;;  %s925_s24 = scalar_lea.vmem %s967_s5, %s676_s28  ;;  %vm597_vm2 = vcmask 7168  }
  0x10   : > { %742 = vmatprep.subr.bf16.mxu0 %v799_v2  ;;  %775 = vmatprep.subr.bf16.mxu1 %v800_v4  ;;  %v231_v6 = vld [vmem:[%s876_s8] sm:$0xff]  ;;  %v232_v7 = vld [vmem:[%s876_s8 + $0x8] sm:$0xff]  ;;  %v233_v8 = vld [vmem:[%s876_s8 + $0x10] sm:$0xff] }
  0x11   : > { %v247_v9 = vpack.c.bf16 %v232_v7, %v231_v6  ;;  %v234_v10 = vld [vmem:[%s876_s8 + $0x18] sm:$0xff]  ;;  %v235_v11 = vld [vmem:[%s876_s8 + $0x20] sm:$0xff]  ;;  %v236_v12 = vld [vmem:[%s876_s8 + $0x28] sm:$0xff] }
  0x12   : > { %v248_v13 = vpack.c.bf16 %v234_v10, %v233_v8  ;;  %v249_v14 = vpack.c.bf16 %v236_v12, %v235_v11  ;;  %v237_v15 = vld [vmem:[%s876_s8 + $0x30] sm:$0xff]  ;;  %v238_v17 = vld [vmem:[%s876_s8 + $0x38] sm:$0xff]  ;;  %v239_v18 = vld [vmem:[%s876_s8 + $0x40] sm:$0xff] }
  0x13   : > { %783 = vmatpush3.bf16.msra.mxu1 %v800_v4  ;;  %726 = vmatprep.mubr.msk.bf16.mxu0 %vm263_vm1, %v247_v9  ;;  %v240_v19 = vld [vmem:[%s876_s8 + $0x48] sm:$0xff]  ;;  %v250_v21 = vpack.c.bf16 %v238_v17, %v237_v15  ;;  %v241_v23 = vld [vmem:[%s876_s8 + $0x50] sm:$0xff]  ;;  %v242_v24 = vld [vmem:[%s876_s8 + $0x58] sm:$0xff] }
  0x14   : > { %776 = vmatprep.subr.bf16.mxu1 %v801_v5  ;;  %727 = vmatmul.mubr.msk.bf16.vlgmr.msra.gmra.mxu0 %vm263_vm1, %v248_v13  ;;  %v251_v22 = vpack.c.bf16 %v240_v19, %v239_v18  ;;  %v243_v25 = vld [vmem:[%s876_s8 + $0x60] sm:$0xff]  ;;  %v244_v26 = vld [vmem:[%s876_s8 + $0x68] sm:$0xff]  ;;  %v252_v27 = vpack.c.bf16 %v242_v24, %v241_v23  ;;  %v245_v29 = vld [vmem:[%s876_s8 + $0x70] sm:$0xff] }
  0x15   : > { %730 = vmatprep.mubr.msk.bf16.mxu0 %vm263_vm1, %v249_v14  ;;  %743 = vmatpush3.bf16.msra.mxu0 %v799_v2  ;;  %v253_v28 = vpack.c.bf16 %v244_v26, %v243_v25  ;;  %v246_v30 = vld [vmem:[%s876_s8 + $0x78] sm:$0xff]  ;;  %v679_v37 = vld [vmem:[%s964_s2] ss:$0 sm:$0xff] }
  0x16   : > { %744 = vmatprep.subr.bf16.mxu0 %v800_v4  ;;  %v254_v31 = vpack.c.bf16 %v246_v30, %v245_v29 }
  0x17   : > { %784 = vmatpush3.bf16.msra.mxu1 %v801_v5 }
  0x18   : > { %777 = vmatprep.subr.bf16.mxu1 %v802_v16 }
  0x19   : > { %745 = vmatpush3.bf16.msra.mxu0 %v800_v4 }
  0x1a   : > { %746 = vmatprep.subr.bf16.mxu0 %v801_v5 }
  0x1b   : > { %785 = vmatpush3.bf16.msra.mxu1 %v802_v16 }
  0x1c   : > { %778 = vmatprep.subr.bf16.mxu1 %v803_v20  ;;  %731 = vmatmul.mubr.msk.bf16.gmra.mxu0 %vm263_vm1, %v250_v21 }
  0x1d   : > { %734 = vmatprep.mubr.msk.bf16.mxu0 %vm263_vm1, %v251_v22  ;;  %747 = vmatpush3.bf16.msra.mxu0 %v801_v5 }
  0x1e   : > { %748 = vmatprep.subr.bf16.mxu0 %v802_v16 }
  0x1f   : > { %786 = vmatpush3.bf16.msra.mxu1 %v803_v20 }
  0x20   : > { %779 = vmatprep.subr.bf16.mxu1 %v804_v32 }
  0x21   : > { %749 = vmatpush3.bf16.msra.mxu0 %v802_v16 }
  0x22   : > { %750 = vmatprep.subr.bf16.mxu0 %v803_v20 }
  0x23   : > { %787 = vmatpush3.bf16.msra.mxu1 %v804_v32 }
  0x24   : > { %735 = vmatmul.mubr.msk.bf16.gmra.mxu0 %vm263_vm1, %v252_v27  ;;  %780 = vmatprep.subr.bf16.mxu1 %v805_v33 }
  0x25   : > { %738 = vmatprep.mubr.msk.bf16.mxu0 %vm263_vm1, %v253_v28  ;;  %751 = vmatpush3.bf16.msra.mxu0 %v803_v20  ;;  %v696_v28 = vld [vmem:[#allocation2] ss:$0 sm:$0xff] }
  0x26   : > { %752 = vmatprep.subr.bf16.mxu0 %v804_v32 }
  0x27   : > { %788 = vmatpush3.bf16.msra.mxu1 %v805_v33 }
  0x28   : > { %781 = vmatprep.subr.bf16.mxu1 %v806_v34 }
  0x29   : > { %753 = vmatpush3.bf16.msra.mxu0 %v804_v32 }
  0x2a   : > { %754 = vmatprep.subr.bf16.mxu0 %v805_v33 }
  0x2b   : > { %789 = vmatpush3.bf16.msra.mxu1 %v806_v34 }
  0x2c   : > { %739 = vmatmul.mubr.msk.bf16.gmra.mxu0 %vm263_vm1, %v254_v31 }
  0x2d   : > { %755 = vmatpush3.bf16.msra.mxu0 %v805_v33 }
  0x2e   : > { %756 = vmatprep.subr.bf16.mxu0 %v806_v34 }
  0x31   : > { %757 = vmatpush3.bf16.msra.mxu0 %v806_v34 }
  0xd4   : > { %v728_v35 = vpop.f32.mrf.mxu0 }
  0xd5   : > { %v335_v41 = vadd.f32 %v728_v35, %v679_v37 }
  0xd6   : > { %v326_v36 = vpop.f32.mrf.mxu0 }
  0xd7   : > { %v327_v39 = vadd.f32 %v679_v37, %v326_v36  ;;  %v391_v48 = vmax.f32 %v335_v41, 0.0 }
  0xd8   : > { %v729_v38 = vpop.f32.mrf.mxu0 }
  0xd9   : > { %v338_v40 = vadd.f32 %v729_v38, %v679_v37  ;;  %v389_v46 = vmax.f32 %v327_v39, 0.0 }
  0xda   : > { %v329_v42 = vpop.f32.mrf.mxu0 }
  0xdb   : > { %v330_v43 = vadd.f32 %v679_v37, %v329_v42  ;;  %v392_v44 = vmax.f32 %v338_v40, 0.0 }
  0xdc   : > { %v732_v45 = vpop.f32.mrf.mxu0 }
  0xdd   : > { %v390_v47 = vmax.f32 %v330_v43, 0.0  ;;  %v406_v51 = vpack.c.bf16 %v392_v44, %v391_v48  ;;  %v351_v55 = vadd.f32 %v732_v45, %v679_v37 }
  0xde   : > { %v342_v49 = vpop.f32.mrf.mxu0 }
  0xdf   : > { %v405_v50 = vpack.c.bf16 %v390_v47, %v389_v46  ;;  %v343_v53 = vadd.f32 %v679_v37, %v342_v49  ;;  %v395_v62 = vmax.f32 %v351_v55, 0.0 }
  0xe0   : > { %v733_v52 = vpop.f32.mrf.mxu0 }
  0xe1   : > { %v354_v54 = vadd.f32 %v733_v52, %v679_v37  ;;  %758 = vmatprep.mubr.bf16.mxu0 %v405_v50  ;;  %v393_v60 = vmax.f32 %v343_v53, 0.0 }
  0xe2   : > { %v345_v56 = vpop.f32.mrf.mxu0  ;;  %759 = vmatmul.mubr.bf16.vlgmr.msra.gmra.mxu0 %v406_v51 }
  0xe3   : > { %v346_v57 = vadd.f32 %v679_v37, %v345_v56  ;;  %v396_v58 = vmax.f32 %v354_v54, 0.0 }
  0xe4   : > { %v736_v59 = vpop.f32.mrf.mxu0 }
  0xe5   : > { %v394_v61 = vmax.f32 %v346_v57, 0.0  ;;  %v408_v1 = vpack.c.bf16 %v396_v58, %v395_v62  ;;  %v367_v5 = vadd.f32 %v736_v59, %v679_v37 }
  0xe6   : > { %v358_v63 = vpop.f32.mrf.mxu0 }
  0xe7   : > { %v407_v0 = vpack.c.bf16 %v394_v61, %v393_v60  ;;  %v359_v3 = vadd.f32 %v679_v37, %v358_v63  ;;  %v399_v12 = vmax.f32 %v367_v5, 0.0 }
  0xe8   : > { %v737_v2 = vpop.f32.mrf.mxu0 }
  0xe9   : > { %v370_v4 = vadd.f32 %v737_v2, %v679_v37  ;;  %762 = vmatprep.mubr.bf16.mxu1 %v407_v0  ;;  %v397_v10 = vmax.f32 %v359_v3, 0.0 }
  0xea   : > { %v361_v6 = vpop.f32.mrf.mxu0  ;;  %763 = vmatmul.mubr.bf16.vlgmr.msra.gmra.mxu1 %v408_v1 }
  0xeb   : > { %v362_v7 = vadd.f32 %v679_v37, %v361_v6  ;;  %v400_v8 = vmax.f32 %v370_v4, 0.0 }
  0xec   : > { %v740_v9 = vpop.f32.mrf.mxu0 }
  0xed   : > { %v398_v11 = vmax.f32 %v362_v7, 0.0  ;;  %v410_v15 = vpack.c.bf16 %v400_v8, %v399_v12  ;;  %v383_v19 = vadd.f32 %v740_v9, %v679_v37 }
  0xee   : > { %v374_v13 = vpop.f32.mrf.mxu0 }
  0xef   : > { %v409_v14 = vpack.c.bf16 %v398_v11, %v397_v10  ;;  %v375_v17 = vadd.f32 %v679_v37, %v374_v13  ;;  %v403_v25 = vmax.f32 %v383_v19, 0.0 }
  0xf0   : > { %v741_v16 = vpop.f32.mrf.mxu0 }
  0xf1   : > { %v386_v18 = vadd.f32 %v741_v16, %v679_v37  ;;  %766 = vmatprep.mubr.bf16.mxu1 %v409_v14  ;;  %v401_v23 = vmax.f32 %v375_v17, 0.0 }
  0xf2   : > { %v377_v20 = vpop.f32.mrf.mxu0  ;;  %767 = vmatmul.mubr.bf16.gmra.mxu1 %v410_v15 }
  0xf3   : > { %v378_v21 = vadd.f32 %v679_v37, %v377_v20  ;;  %v404_v22 = vmax.f32 %v386_v18, 0.0 }
  0xf5   : > { %v402_v24 = vmax.f32 %v378_v21, 0.0  ;;  %v412_v27 = vpack.c.bf16 %v404_v22, %v403_v25 }
  0xf7   : > { %v411_v26 = vpack.c.bf16 %v402_v24, %v401_v23 }
  0xf9   : > { %770 = vmatprep.mubr.bf16.mxu1 %v411_v26 }
  0xfa   : > { %771 = vmatmul.mubr.bf16.gmra.mxu1 %v412_v27 }
 0x1a2   : > { %v760_v29 = vpop.f32.mrf.mxu0 }
 0x1a3   : > { %v583_v30 = vadd.f32 %v760_v29, %v696_v28 }
 0x1a4   : > { %v511_v31 = vpop.f32.mrf.mxu0 }
 0x1a5   : > { %600 = vst.msk [vmem:[%s925_s24 + $0x10] sm:$0xff] %vm597_vm2, %v583_v30  ;;  %v581_v32 = vadd.f32 %v696_v28, %v511_v31 }
 0x1a6   : > { %v761_v33 = vpop.f32.mrf.mxu0 }
 0x1a7   : > { %598 = vst.msk [vmem:[%s925_s24] sm:$0xff] %vm597_vm2, %v581_v32  ;;  %v584_v34 = vadd.f32 %v761_v33, %v696_v28 }
 0x1a8   : > { %v514_v35 = vpop.f32.mrf.mxu0 }
 0x1a9   : > { %601 = vst.msk [vmem:[%s925_s24 + $0x18] sm:$0xff] %vm597_vm2, %v584_v34  ;;  %v582_v36 = vadd.f32 %v696_v28, %v514_v35 }
 0x1aa   : > { %v764_v37 = vpop.f32.mrf.mxu1 }
 0x1ab   : > { %599 = vst.msk [vmem:[%s925_s24 + $0x8] sm:$0xff] %vm597_vm2, %v582_v36  ;;  %v587_v38 = vadd.f32 %v764_v37, %v696_v28 }
 0x1ac   : > { %v527_v39 = vpop.f32.mrf.mxu1 }
 0x1ad   : > { %604 = vst.msk [vmem:[%s925_s24 + $0x30] sm:$0xff] %vm597_vm2, %v587_v38  ;;  %v585_v40 = vadd.f32 %v696_v28, %v527_v39 }
 0x1ae   : > { %v765_v41 = vpop.f32.mrf.mxu1 }
 0x1af   : > { %602 = vst.msk [vmem:[%s925_s24 + $0x20] sm:$0xff] %vm597_vm2, %v585_v40  ;;  %v588_v42 = vadd.f32 %v765_v41, %v696_v28 }
 0x1b0   : > { %v530_v43 = vpop.f32.mrf.mxu1 }
 0x1b1   : > { %605 = vst.msk [vmem:[%s925_s24 + $0x38] sm:$0xff] %vm597_vm2, %v588_v42  ;;  %v586_v44 = vadd.f32 %v696_v28, %v530_v43 }
 0x1b2   : > { %v768_v45 = vpop.f32.mrf.mxu1 }
 0x1b3   : > { %603 = vst.msk [vmem:[%s925_s24 + $0x28] sm:$0xff] %vm597_vm2, %v586_v44  ;;  %v591_v46 = vadd.f32 %v768_v45, %v696_v28 }
 0x1b4   : > { %v543_v47 = vpop.f32.mrf.mxu1 }
 0x1b5   : > { %608 = vst.msk [vmem:[%s925_s24 + $0x50] sm:$0xff] %vm597_vm2, %v591_v46  ;;  %v589_v48 = vadd.f32 %v696_v28, %v543_v47 }
 0x1b6   : > { %v769_v49 = vpop.f32.mrf.mxu1 }
 0x1b7   : > { %606 = vst.msk [vmem:[%s925_s24 + $0x40] sm:$0xff] %vm597_vm2, %v589_v48  ;;  %v592_v50 = vadd.f32 %v769_v49, %v696_v28 }
 0x1b8   : > { %v546_v51 = vpop.f32.mrf.mxu1 }
 0x1b9   : > { %609 = vst.msk [vmem:[%s925_s24 + $0x58] sm:$0xff] %vm597_vm2, %v592_v50  ;;  %v590_v52 = vadd.f32 %v696_v28, %v546_v51 }
 0x1ba   : > { %v772_v53 = vpop.f32.mrf.mxu1 }
 0x1bb   : > { %607 = vst.msk [vmem:[%s925_s24 + $0x48] sm:$0xff] %vm597_vm2, %v590_v52  ;;  %v595_v54 = vadd.f32 %v772_v53, %v696_v28 }
 0x1bc   : > { %v559_v55 = vpop.f32.mrf.mxu1 }
 0x1bd   : > { %612 = vst.msk [vmem:[%s925_s24 + $0x70] sm:$0xff] %vm597_vm2, %v595_v54  ;;  %v593_v56 = vadd.f32 %v696_v28, %v559_v55 }
 0x1be   : > { %v773_v57 = vpop.f32.mrf.mxu1 }
 0x1bf   : > { %610 = vst.msk [vmem:[%s925_s24 + $0x60] sm:$0xff] %vm597_vm2, %v593_v56  ;;  %v596_v58 = vadd.f32 %v773_v57, %v696_v28 }
 0x1c0   : > { %v562_v59 = vpop.f32.mrf.mxu1 }
 0x1c1   : > { %613 = vst.msk [vmem:[%s925_s24 + $0x78] sm:$0xff] %vm597_vm2, %v596_v58  ;;  %v594_v60 = vadd.f32 %v696_v28, %v562_v59 }
 0x1c3   : > { %611 = vst.msk [vmem:[%s925_s24 + $0x68] sm:$0xff] %vm597_vm2, %v594_v60 }
 0x1c4 PF: > { %s17_s20 = sadd.s32 1, %s813_s20  }
 0x1c5   : > { %p14_p4 = scmp.ge.s32.totalorder %s17_s20, 6  }
 0x1c7   :  { %16 = sbr.rel (!%p14_p4) target bundleno = 3 (0x3), region = 70 }

</bundles_post_ra>
